<compile_context>
chip_gen: v6e
topology: v6e:2x2x1
jax: 0.10.0
libtpu: 0.0.40
codegen_flags: <defaults>
</compile_context>

<pallas_src>
import jax
import jax.numpy as jnp
from jax.experimental import pallas as pl
from jax.experimental.pallas import tpu as pltpu

# Model dimensions (from the PyTorch module; input/output sizes consistent
# with the data-dependent X.shape[1] / y.shape[1]).
INPUT_SIZE = 16
HIDDEN1 = 128
HIDDEN2 = 64
HIDDEN3 = 32
OUTPUT_SIZE = 4


def mlp_kernel(x_ref,
               w1_ref, b1_ref,
               w2_ref, b2_ref,
               w3_ref, b3_ref,
               w4_ref, b4_ref,
               o_ref):
    """Fused MLP forward for one batch tile.  All matmuls hit the MXU (bf16
    operands, f32 accumulate); bias-add / ReLU run on the f32 accumulator.
    Intermediate activations are rounded to bf16 between layers (documented
    precision choice; accumulation itself stays f32)."""
    cdt = w1_ref.dtype                      # compute dtype fed to the MXU (bf16)
    x = x_ref[...]                          # [tile, 16] bf16

    h = jnp.dot(x, w1_ref[...], preferred_element_type=jnp.float32) + b1_ref[...]
    h = jnp.maximum(h, 0.0)                 # relu1 ; dropout1 (p=0.2) = identity (eval)

    h = jnp.dot(h.astype(cdt), w2_ref[...],
                preferred_element_type=jnp.float32) + b2_ref[...]
    h = jnp.maximum(h, 0.0)                 # relu2 ; dropout2 = identity (eval)

    h = jnp.dot(h.astype(cdt), w3_ref[...],
                preferred_element_type=jnp.float32) + b3_ref[...]
    h = jnp.maximum(h, 0.0)                 # relu3 ; dropout3 = identity (eval)

    o_ref[...] = (jnp.dot(h.astype(cdt), w4_ref[...],
                          preferred_element_type=jnp.float32)
                  + b4_ref[...]).astype(o_ref.dtype)


def prepare_params(params, compute_dtype=jnp.bfloat16):
    """One-time preparation: weights -> bf16 (MXU fast path), biases -> f32.
    Hoisted out of the per-call path so the serving loop only runs the kernel."""
    prepped = {}
    for k, v in params.items():
        prepped[k] = jnp.asarray(v, compute_dtype if k.startswith("w") else jnp.float32)
    return prepped


def _choose_batch_tile(B, requested):
    """Tile policy: single step for small B (1-TC chips: grid is a serial loop,
    extra steps only add ~0.35us/step + prologue); 512-row tiles for large B
    (pipelining depth, and >=2 steps per TensorCore when the batch axis shards
    across v7x's 2 TCs via dimension_semantics=('parallel',))."""
    b8 = max(8, ((B + 7) // 8) * 8)         # padded batch, multiple of 8 sublanes
    if requested is None:
        tile = b8 if b8 <= 512 else 512
    else:
        tile = max(8, (requested // 8) * 8)
    return min(tile, b8)


def neural_network_forward(x, params, *, batch_tile=None):
    """x: [B, INPUT_SIZE] float32.  params: prepare_params() output -- weights
    [in, out] (PyTorch Linear W pre-transposed) in bf16, biases [1, out] f32."""
    B, D = x.shape
    assert D == INPUT_SIZE

    w1, b1 = params["w1"], params["b1"]     # [16,128], [1,128]
    w2, b2 = params["w2"], params["b2"]     # [128,64], [1,64]
    w3, b3 = params["w3"], params["b3"]     # [64,32],  [1,32]
    w4, b4 = params["w4"], params["b4"]     # [32,4],   [1,4]
    compute_dtype = w1.dtype

    tile = _choose_batch_tile(B, batch_tile)
    grid = (pl.cdiv(B, tile),)
    x_c = x.astype(compute_dtype)

    # Grid-invariant constants: whole-array resident in VMEM (~100 KB total),
    # no per-step double-buffering / re-DMA.
    resident = pl.BlockSpec(memory_space=pltpu.MemorySpace.VMEM)

    itemsize = jnp.dtype(compute_dtype).itemsize
    flops = 2 * B * (INPUT_SIZE * HIDDEN1 + HIDDEN1 * HIDDEN2
                     + HIDDEN2 * HIDDEN3 + HIDDEN3 * OUTPUT_SIZE)
    bytes_accessed = (x_c.size * itemsize
                      + (w1.size + w2.size + w3.size + w4.size) * itemsize
                      + (b1.size + b2.size + b3.size + b4.size) * 4
                      + B * OUTPUT_SIZE * 4)
    cost = pl.CostEstimate(flops=flops, transcendentals=0,
                           bytes_accessed=bytes_accessed)

    return pl.pallas_call(
        mlp_kernel,
        out_shape=jax.ShapeDtypeStruct((B, OUTPUT_SIZE), jnp.float32),
        grid=grid,
        in_specs=[
            pl.BlockSpec((tile, INPUT_SIZE), lambda i: (i, 0)),   # x
            resident, resident,   # w1, b1
            resident, resident,   # w2, b2
            resident, resident,   # w3, b3
            resident, resident,   # w4, b4
        ],
        # Real output width (4 lanes): block last dim == full array dim, so no
        # 128-multiple requirement; only the 4 real f32 columns hit HBM.
        out_specs=pl.BlockSpec((tile, OUTPUT_SIZE), lambda i: (i, 0)),
        compiler_params=pltpu.CompilerParams(
            dimension_semantics=("parallel",),   # shards batch steps across v7x TCs
        ),
        cost_estimate=cost,
    )(x_c, w1, b1, w2, b2, w3, b3, w4, b4)


def init_params(key):
    """Deterministic parameter init (PyTorch Linear-style uniform fan-in).
    Stored already transposed to [in, out] for the kernel."""
    def linear(key, fan_in, fan_out):
        kw, kb = jax.random.split(key)
        bound = 1.0 / jnp.sqrt(fan_in)
        w = jax.random.uniform(kw, (fan_in, fan_out), jnp.float32, -bound, bound)
        b = jax.random.uniform(kb, (1, fan_out), jnp.float32, -bound, bound)
        return w, b

    k1, k2, k3, k4 = jax.random.split(key, 4)
    w1, b1 = linear(k1, INPUT_SIZE, HIDDEN1)
    w2, b2 = linear(k2, HIDDEN1, HIDDEN2)
    w3, b3 = linear(k3, HIDDEN2, HIDDEN3)
    w4, b4 = linear(k4, HIDDEN3, OUTPUT_SIZE)
    return {"w1": w1, "b1": b1, "w2": w2, "b2": b2,
            "w3": w3, "b3": b3, "w4": w4, "b4": b4}


def reference_forward(x, p):
    """Plain-JAX f32 reference for correctness check (dropout = identity)."""
    h = jnp.maximum(x @ p["w1"] + p["b1"], 0.0)
    h = jnp.maximum(h @ p["w2"] + p["b2"], 0.0)
    h = jnp.maximum(h @ p["w3"] + p["b3"], 0.0)
    return h @ p["w4"] + p["b4"]


if __name__ == "__main__":
    key = jax.random.PRNGKey(0)
    k_params, k_x = jax.random.split(key)

    raw_params = init_params(k_params)
    params = prepare_params(raw_params)     # one-time bf16 cast, out of hot path

    # Small-batch path: single grid step (grid=(1,)), whole batch as one tile.
    B = 256
    x = jax.random.normal(k_x, (B, INPUT_SIZE), jnp.float32)
    out = jax.block_until_ready(neural_network_forward(x, params))
    ref = reference_forward(x, raw_params)
    assert out.shape == (B, OUTPUT_SIZE)
    # bf16 operands / bf16 inter-layer activations vs f32 reference.
    assert jnp.allclose(out, ref, atol=5e-2, rtol=5e-2), \
        float(jnp.max(jnp.abs(out - ref)))

    # Multi-step path with a partial last tile (exercises the masked 4-lane
    # store on a partial batch block): B=200, tile=64 -> 4 steps, last has 8 rows.
    B2 = 200
    x2 = jax.random.normal(jax.random.PRNGKey(1), (B2, INPUT_SIZE), jnp.float32)
    out2 = jax.block_until_ready(neural_network_forward(x2, params, batch_tile=64))
    ref2 = reference_forward(x2, raw_params)
    assert out2.shape == (B2, OUTPUT_SIZE)
    assert jnp.allclose(out2, ref2, atol=5e-2, rtol=5e-2), \
        float(jnp.max(jnp.abs(out2 - ref2)))

    print("KERNEL_OK")
</pallas_src>

<mosaic_0001>
module attributes {stable_mosaic.version = 11 : i64} {
  func.func @mlp_kernel(%arg0: i32, %arg1: memref<256x16xbf16, #tpu.memory_space<vmem>>, %arg2: memref<16x128xbf16, #tpu.memory_space<vmem>>, %arg3: memref<1x128xf32, #tpu.memory_space<vmem>>, %arg4: memref<128x64xbf16, #tpu.memory_space<vmem>>, %arg5: memref<1x64xf32, #tpu.memory_space<vmem>>, %arg6: memref<64x32xbf16, #tpu.memory_space<vmem>>, %arg7: memref<1x32xf32, #tpu.memory_space<vmem>>, %arg8: memref<32x4xbf16, #tpu.memory_space<vmem>>, %arg9: memref<1x4xf32, #tpu.memory_space<vmem>>, %arg10: memref<256x4xf32, #tpu.memory_space<vmem>>) attributes {dimension_semantics = [#tpu.dimension_semantics<parallel>], iteration_bounds = array<i64: 1>, scalar_prefetch = 0 : i64, scratch_operands = 0 : i64, tpu.core_type = #tpu.core_type<tc>, window_params = [{transform_indices = @transform_0, window_bounds = array<i64: 256, 16>}, {pipeline_mode = #tpu.pipeline_mode<synchronous>, transform_indices = @transform_1, window_bounds = array<i64: 16, 128>}, {pipeline_mode = #tpu.pipeline_mode<synchronous>, transform_indices = @transform_2, window_bounds = array<i64: 1, 128>}, {pipeline_mode = #tpu.pipeline_mode<synchronous>, transform_indices = @transform_3, window_bounds = array<i64: 128, 64>}, {pipeline_mode = #tpu.pipeline_mode<synchronous>, transform_indices = @transform_4, window_bounds = array<i64: 1, 64>}, {pipeline_mode = #tpu.pipeline_mode<synchronous>, transform_indices = @transform_5, window_bounds = array<i64: 64, 32>}, {pipeline_mode = #tpu.pipeline_mode<synchronous>, transform_indices = @transform_6, window_bounds = array<i64: 1, 32>}, {pipeline_mode = #tpu.pipeline_mode<synchronous>, transform_indices = @transform_7, window_bounds = array<i64: 32, 4>}, {pipeline_mode = #tpu.pipeline_mode<synchronous>, transform_indices = @transform_8, window_bounds = array<i64: 1, 4>}, {transform_indices = @transform_9, window_bounds = array<i64: 256, 4>}]} {
    %c0 = arith.constant 0 : index
    %c0_0 = arith.constant 0 : index
    %0 = vector.load %arg1[%c0, %c0_0] : memref<256x16xbf16, #tpu.memory_space<vmem>>, vector<256x16xbf16>
    %c0_1 = arith.constant 0 : index
    %c0_2 = arith.constant 0 : index
    %1 = vector.load %arg2[%c0_1, %c0_2] : memref<16x128xbf16, #tpu.memory_space<vmem>>, vector<16x128xbf16>
    %cst = arith.constant dense<0.000000e+00> : vector<256x128xf32>
    %2 = tpu.matmul %0, %1, %cst {dimension_numbers = #tpu.dot_dimension_numbers<[1], [0], [0], [1], [0, 0, 1, 1], [], []>} : vector<256x16xbf16>, vector<16x128xbf16>, vector<256x128xf32> -> vector<256x128xf32>
    %c0_3 = arith.constant 0 : index
    %c0_4 = arith.constant 0 : index
    %3 = vector.load %arg3[%c0_3, %c0_4] : memref<1x128xf32, #tpu.memory_space<vmem>>, vector<1x128xf32>
    %4 = vector.broadcast %3 : vector<1x128xf32> to vector<256x128xf32>
    %5 = arith.addf %2, %4 : vector<256x128xf32>
    %cst_5 = arith.constant 0.000000e+00 : f32
    %6 = vector.broadcast %cst_5 : f32 to vector<256x128xf32>
    %7 = arith.maximumf %5, %6 : vector<256x128xf32>
    %8 = arith.truncf %7 : vector<256x128xf32> to vector<256x128xbf16>
    %c0_6 = arith.constant 0 : index
    %c0_7 = arith.constant 0 : index
    %9 = vector.load %arg4[%c0_6, %c0_7] : memref<128x64xbf16, #tpu.memory_space<vmem>>, vector<128x64xbf16>
    %cst_8 = arith.constant dense<0.000000e+00> : vector<256x64xf32>
    %10 = tpu.matmul %8, %9, %cst_8 {dimension_numbers = #tpu.dot_dimension_numbers<[1], [0], [0], [1], [0, 0, 1, 1], [], []>} : vector<256x128xbf16>, vector<128x64xbf16>, vector<256x64xf32> -> vector<256x64xf32>
    %c0_9 = arith.constant 0 : index
    %c0_10 = arith.constant 0 : index
    %11 = vector.load %arg5[%c0_9, %c0_10] : memref<1x64xf32, #tpu.memory_space<vmem>>, vector<1x64xf32>
    %12 = vector.broadcast %11 : vector<1x64xf32> to vector<256x64xf32>
    %13 = arith.addf %10, %12 : vector<256x64xf32>
    %cst_11 = arith.constant 0.000000e+00 : f32
    %14 = vector.broadcast %cst_11 : f32 to vector<256x64xf32>
    %15 = arith.maximumf %13, %14 : vector<256x64xf32>
    %16 = arith.truncf %15 : vector<256x64xf32> to vector<256x64xbf16>
    %c0_12 = arith.constant 0 : index
    %c0_13 = arith.constant 0 : index
    %17 = vector.load %arg6[%c0_12, %c0_13] : memref<64x32xbf16, #tpu.memory_space<vmem>>, vector<64x32xbf16>
    %cst_14 = arith.constant dense<0.000000e+00> : vector<256x32xf32>
    %18 = tpu.matmul %16, %17, %cst_14 {dimension_numbers = #tpu.dot_dimension_numbers<[1], [0], [0], [1], [0, 0, 1, 1], [], []>} : vector<256x64xbf16>, vector<64x32xbf16>, vector<256x32xf32> -> vector<256x32xf32>
    %c0_15 = arith.constant 0 : index
    %c0_16 = arith.constant 0 : index
    %19 = vector.load %arg7[%c0_15, %c0_16] : memref<1x32xf32, #tpu.memory_space<vmem>>, vector<1x32xf32>
    %20 = vector.broadcast %19 : vector<1x32xf32> to vector<256x32xf32>
    %21 = arith.addf %18, %20 : vector<256x32xf32>
    %cst_17 = arith.constant 0.000000e+00 : f32
    %22 = vector.broadcast %cst_17 : f32 to vector<256x32xf32>
    %23 = arith.maximumf %21, %22 : vector<256x32xf32>
    %24 = arith.truncf %23 : vector<256x32xf32> to vector<256x32xbf16>
    %c0_18 = arith.constant 0 : index
    %c0_19 = arith.constant 0 : index
    %25 = vector.load %arg8[%c0_18, %c0_19] : memref<32x4xbf16, #tpu.memory_space<vmem>>, vector<32x4xbf16>
    %cst_20 = arith.constant dense<0.000000e+00> : vector<256x4xf32>
    %26 = tpu.matmul %24, %25, %cst_20 {dimension_numbers = #tpu.dot_dimension_numbers<[1], [0], [0], [1], [0, 0, 1, 1], [], []>} : vector<256x32xbf16>, vector<32x4xbf16>, vector<256x4xf32> -> vector<256x4xf32>
    %c0_21 = arith.constant 0 : index
    %c0_22 = arith.constant 0 : index
    %27 = vector.load %arg9[%c0_21, %c0_22] : memref<1x4xf32, #tpu.memory_space<vmem>>, vector<1x4xf32>
    %28 = vector.broadcast %27 : vector<1x4xf32> to vector<256x4xf32>
    %29 = arith.addf %26, %28 : vector<256x4xf32>
    %c0_23 = arith.constant 0 : index
    %c0_24 = arith.constant 0 : index
    %30 = vector.load %arg10[%c0_23, %c0_24] : memref<256x4xf32, #tpu.memory_space<vmem>>, vector<256x4xf32>
    tpu.vector_store %arg10[%c0_23, %c0_24], %29 {strides = array<i32>} : memref<256x4xf32, #tpu.memory_space<vmem>>, vector<256x4xf32>,
    return
  }
  func.func @transform_0(%arg0: i32) -> (i32, i32) {
    %c0_i32 = arith.constant 0 : i32
    %c0_i32_0 = arith.constant 0 : i32
    return %arg0, %c0_i32 : i32, i32
  }
  func.func @transform_1(%arg0: i32) -> (i32, i32) {
    %c0_i32 = arith.constant 0 : i32
    %c0_i32_0 = arith.constant 0 : i32
    %c0_i32_1 = arith.constant 0 : i32
    return %c0_i32, %c0_i32_0 : i32, i32
  }
  func.func @transform_2(%arg0: i32) -> (i32, i32) {
    %c0_i32 = arith.constant 0 : i32
    %c0_i32_0 = arith.constant 0 : i32
    %c0_i32_1 = arith.constant 0 : i32
    return %c0_i32, %c0_i32_0 : i32, i32
  }
  func.func @transform_3(%arg0: i32) -> (i32, i32) {
    %c0_i32 = arith.constant 0 : i32
    %c0_i32_0 = arith.constant 0 : i32
    %c0_i32_1 = arith.constant 0 : i32
    return %c0_i32, %c0_i32_0 : i32, i32
  }
  func.func @transform_4(%arg0: i32) -> (i32, i32) {
    %c0_i32 = arith.constant 0 : i32
    %c0_i32_0 = arith.constant 0 : i32
    %c0_i32_1 = arith.constant 0 : i32
    return %c0_i32, %c0_i32_0 : i32, i32
  }
  func.func @transform_5(%arg0: i32) -> (i32, i32) {
    %c0_i32 = arith.constant 0 : i32
    %c0_i32_0 = arith.constant 0 : i32
    %c0_i32_1 = arith.constant 0 : i32
    return %c0_i32, %c0_i32_0 : i32, i32
  }
  func.func @transform_6(%arg0: i32) -> (i32, i32) {
    %c0_i32 = arith.constant 0 : i32
    %c0_i32_0 = arith.constant 0 : i32
    %c0_i32_1 = arith.constant 0 : i32
    return %c0_i32, %c0_i32_0 : i32, i32
  }
  func.func @transform_7(%arg0: i32) -> (i32, i32) {
    %c0_i32 = arith.constant 0 : i32
    %c0_i32_0 = arith.constant 0 : i32
    %c0_i32_1 = arith.constant 0 : i32
    return %c0_i32, %c0_i32_0 : i32, i32
  }
  func.func @transform_8(%arg0: i32) -> (i32, i32) {
    %c0_i32 = arith.constant 0 : i32
    %c0_i32_0 = arith.constant 0 : i32
    %c0_i32_1 = arith.constant 0 : i32
    return %c0_i32, %c0_i32_0 : i32, i32
  }
  func.func @transform_9(%arg0: i32) -> (i32, i32) {
    %c0_i32 = arith.constant 0 : i32
    %c0_i32_0 = arith.constant 0 : i32
    return %arg0, %c0_i32 : i32, i32
  }
}

</mosaic_0001>

<bundles_post_ra>
// kernel: tpu_custom_call.1
= control target key start
LH: loop header
LB: loop body
LE: loop exit
PB: predicated region body
PF: predicated region fallthrough
CT: control target
= control target key end

     0   :  { %vm160_vm0 = vcmask 130048   ;;  %vm737_vm1 = vcmask 523264   ;;  %vm1018_vm2 = vcmask 261120   ;;  %vm1228_vm3 = vcmask 31744   ;;  %s2087_s1 = inlined_call_operand.vmem [shape: bf16[16,128], index: 1, kind: input, shape index: {}]   ;;  %s2088_s0 = inlined_call_operand.vmem [shape: bf16[256,16], index: 0, kind: input, shape index: {}]   ;;  %s2089_s3 = inlined_call_operand.vmem [shape: bf16[128,64], index: 3, kind: input, shape index: {}]   ;;  %s2090_s5 = inlined_call_operand.vmem [shape: bf16[64,32], index: 5, kind: input, shape index: {}]   ;;  %s2091_s2 = inlined_call_operand.vmem [shape: f32[1,128], index: 2, kind: input, shape index: {}]   ;;  %s2092_s7 = inlined_call_operand.vmem [shape: bf16[32,4], index: 7, kind: input, shape index: {}]   ;;  %s2093_s4 = inlined_call_operand.vmem [shape: f32[1,64], index: 4, kind: input, shape index: {}]   ;;  %s2094_s6 = inlined_call_operand.vmem [shape: f32[1,32], index: 6, kind: input, shape index: {}]   ;;  %s2095_s8 = inlined_call_operand.vmem [shape: f32[1,4], index: 8, kind: input, shape index: {}]   ;;  %s2096_s9 = inlined_call_operand.vmem [shape: f32[256,4], index: 9, kind: output, shape index: {}]  }
   0x1   :  { %v1589_v0 = vld [vmem:[%s2087_s1] sm:$0xff]   ;;  %v1591_v2 = vld [vmem:[%s2088_s0 + $0x8] sm:$0xff]   ;;  %v1592_v3 = vld [vmem:[%s2088_s0 + $0x10] sm:$0xff]  }
   0x2   :  { %v1590_v1 = vld [vmem:[%s2088_s0] sm:$0xff]   ;;  %1427 = vmatprep.subr.bf16.mxu0 %v1589_v0  ;;  %v1593_v4 = vld [vmem:[%s2088_s0 + $0x18] sm:$0xff]   ;;  %v1595_v6 = vld [vmem:[%s2088_s0 + $0x28] sm:$0xff]  }
   0x3   :  { %1428 = vmatpush3.bf16.msra.mxu0 %v1589_v0  ;;  %1429 = vmatprep.mubr.msk.bf16.mxu0 %vm160_vm0, %v1590_v1  ;;  %v1594_v5 = vld [vmem:[%s2088_s0 + $0x20] sm:$0xff]   ;;  %v1606_v7 = vld [vmem:[%s2089_s3 + $0x38] sm:$0xff]   ;;  %v1607_v8 = vld [vmem:[%s2089_s3 + $0x30] sm:$0xff]  }
   0x4   :  { %v1596_v9 = vld [vmem:[%s2088_s0 + $0x30] sm:$0xff]   ;;  %1461 = vmatprep.subr.bf16.mxu1 %v1606_v7  ;;  %v1608_v10 = vld [vmem:[%s2089_s3 + $0x28] sm:$0xff]   ;;  %v1609_v11 = vld [vmem:[%s2089_s3 + $0x20] sm:$0xff]  }
   0x5   :  { %1462 = vmatpush3.bf16.msra.mxu1 %v1606_v7  ;;  %v1597_v12 = vld [vmem:[%s2088_s0 + $0x38] sm:$0xff]   ;;  %v1598_v13 = vld [vmem:[%s2088_s0 + $0x40] sm:$0xff]   ;;  %v1599_v15 = vld [vmem:[%s2088_s0 + $0x48] sm:$0xff]  }
   0x6   :  { %1430 = vmatmul.mubr.msk.bf16.vlgmr.msra.gmra.mxu0 %vm160_vm0, %v1591_v2  ;;  %1463 = vmatprep.subr.bf16.mxu1 %v1607_v8  ;;  %v1610_v14 = vld [vmem:[%s2089_s3 + $0x18] sm:$0xff]   ;;  %v1600_v16 = vld [vmem:[%s2088_s0 + $0x50] sm:$0xff]   ;;  %v1602_v18 = vld [vmem:[%s2088_s0 + $0x60] sm:$0xff]  }
   0x7   :  { %1433 = vmatprep.mubr.msk.bf16.mxu0 %vm160_vm0, %v1592_v3  ;;  %v1601_v17 = vld [vmem:[%s2088_s0 + $0x58] sm:$0xff]   ;;  %v1603_v19 = vld [vmem:[%s2088_s0 + $0x68] sm:$0xff]   ;;  %v1604_v20 = vld [vmem:[%s2088_s0 + $0x70] sm:$0xff]  }
   0x8   :  { %v1605_v21 = vld [vmem:[%s2088_s0 + $0x78] sm:$0xff]   ;;  %v1611_v22 = vld [vmem:[%s2089_s3 + $0x10] sm:$0xff]   ;;  %v1612_v23 = vld [vmem:[%s2089_s3 + $0x8] sm:$0xff]  }
   0x9   :  { %1464 = vmatpush3.bf16.msra.mxu1 %v1607_v8  ;;  %v1613_v24 = vld [vmem:[%s2089_s3] sm:$0xff]   ;;  %v1614_v25 = vld [vmem:[%s2090_s5 + $0x18] sm:$0xff]   ;;  %v1615_v26 = vld [vmem:[%s2090_s5 + $0x10] sm:$0xff]  }
   0xa   :  { %1465 = vmatprep.subr.bf16.mxu1 %v1608_v10  ;;  %1509 = vmatprep.subr.bf16.mxu0 %v1614_v25  ;;  %v1616_v27 = vld [vmem:[%s2090_s5 + $0x8] sm:$0xff]   ;;  %v1617_v28 = vld [vmem:[%s2090_s5] sm:$0xff]  }
   0xb   :  { %1510 = vmatpush3.bf16.msra.mxu0 %v1614_v25  ;;  %v1776_v31 = vld [vmem:[%s2091_s2] ss:$0 sm:$0xff] }
   0xc   :  { %1511 = vmatprep.subr.bf16.mxu0 %v1615_v26 }
   0xd   :  { %1466 = vmatpush3.bf16.msra.mxu1 %v1608_v10 }
   0xe   :  { %1434 = vmatmul.mubr.msk.bf16.gmra.mxu0 %vm160_vm0, %v1593_v4  ;;  %1467 = vmatprep.subr.bf16.mxu1 %v1609_v11 }
   0xf   :  { %1437 = vmatprep.mubr.msk.bf16.mxu0 %vm160_vm0, %v1594_v5  ;;  %1512 = vmatpush3.bf16.msra.mxu0 %v1615_v26 }
  0x10   :  { %1513 = vmatprep.subr.bf16.mxu0 %v1616_v27 }
  0x11   :  { %1468 = vmatpush3.bf16.msra.mxu1 %v1609_v11 }
  0x12   :  { %1469 = vmatprep.subr.bf16.mxu1 %v1610_v14 }
  0x13   :  { %1514 = vmatpush3.bf16.msra.mxu0 %v1616_v27 }
  0x14   :  { %1515 = vmatprep.subr.bf16.mxu0 %v1617_v28 }
  0x15   :  { %1470 = vmatpush3.bf16.msra.mxu1 %v1610_v14 }
  0x16   :  { %1438 = vmatmul.mubr.msk.bf16.gmra.mxu0 %vm160_vm0, %v1595_v6  ;;  %1471 = vmatprep.subr.bf16.mxu1 %v1611_v22 }
  0x17   :  { %1441 = vmatprep.mubr.msk.bf16.mxu0 %vm160_vm0, %v1596_v9  ;;  %1516 = vmatpush3.bf16.msra.mxu0 %v1617_v28 }
  0x19   :  { %1472 = vmatpush3.bf16.msra.mxu1 %v1611_v22 }
  0x1a   :  { %1473 = vmatprep.subr.bf16.mxu1 %v1612_v23 }
  0x1d   :  { %1474 = vmatpush3.bf16.msra.mxu1 %v1612_v23 }
  0x1e   :  { %1442 = vmatmul.mubr.msk.bf16.gmra.mxu0 %vm160_vm0, %v1597_v12  ;;  %1475 = vmatprep.subr.bf16.mxu1 %v1613_v24 }
  0x1f   :  { %1445 = vmatprep.mubr.msk.bf16.mxu0 %vm160_vm0, %v1598_v13 }
  0x21   :  { %1476 = vmatpush3.bf16.msra.mxu1 %v1613_v24 }
  0x26   :  { %1446 = vmatmul.mubr.msk.bf16.gmra.mxu0 %vm160_vm0, %v1599_v15 }
  0x27   :  { %1449 = vmatprep.mubr.msk.bf16.mxu0 %vm160_vm0, %v1600_v16 }
  0x2e   :  { %1450 = vmatmul.mubr.msk.bf16.gmra.mxu0 %vm160_vm0, %v1601_v17 }
  0x2f   :  { %1453 = vmatprep.mubr.msk.bf16.mxu0 %vm160_vm0, %v1602_v18 }
  0x36   :  { %1454 = vmatmul.mubr.msk.bf16.gmra.mxu0 %vm160_vm0, %v1603_v19 }
  0x37   :  { %1457 = vmatprep.mubr.msk.bf16.mxu0 %vm160_vm0, %v1604_v20 }
  0x3e   :  { %1458 = vmatmul.mubr.msk.bf16.gmra.mxu0 %vm160_vm0, %v1605_v21 }
  0xc6   :  { %v1431_v29 = vpop.f32.mrf.mxu0 }
  0xc7   :  { %v252_v35 = vadd.f32 %v1431_v29, %v1776_v31 }
  0xc8   :  { %v243_v30 = vpop.f32.mrf.mxu0 }
  0xc9   :  { %v244_v33 = vadd.f32 %v1776_v31, %v243_v30  ;;  %v372_v42 = vmax.f32 %v252_v35, 0.0 }
  0xca   :  { %v1432_v32 = vpop.f32.mrf.mxu0 }
  0xcb   :  { %v255_v34 = vadd.f32 %v1432_v32, %v1776_v31  ;;  %v370_v40 = vmax.f32 %v244_v33, 0.0 }
  0xcc   :  { %v246_v36 = vpop.f32.mrf.mxu0 }
  0xcd   :  { %v247_v37 = vadd.f32 %v1776_v31, %v246_v36  ;;  %v373_v38 = vmax.f32 %v255_v34, 0.0 }
  0xce   :  { %v1435_v39 = vpop.f32.mrf.mxu0 }
  0xcf   :  { %v371_v41 = vmax.f32 %v247_v37, 0.0  ;;  %v403_v45 = vpack.c.bf16 %v373_v38, %v372_v42  ;;  %v268_v49 = vadd.f32 %v1435_v39, %v1776_v31 }
  0xd0   :  { %v259_v43 = vpop.f32.mrf.mxu0 }
  0xd1   :  { %v402_v44 = vpack.c.bf16 %v371_v41, %v370_v40  ;;  %v260_v47 = vadd.f32 %v1776_v31, %v259_v43  ;;  %v376_v56 = vmax.f32 %v268_v49, 0.0 }
  0xd2   :  { %v1436_v46 = vpop.f32.mrf.mxu0 }
  0xd3   :  { %v271_v48 = vadd.f32 %v1436_v46, %v1776_v31  ;;  %1477 = vmatprep.mubr.bf16.mxu1 %v402_v44  ;;  %v374_v54 = vmax.f32 %v260_v47, 0.0 }
  0xd4   :  { %v262_v50 = vpop.f32.mrf.mxu0  ;;  %1478 = vmatmul.mubr.bf16.vlgmr.msra.gmra.mxu1 %v403_v45 }
  0xd5   :  { %v263_v51 = vadd.f32 %v1776_v31, %v262_v50  ;;  %v377_v52 = vmax.f32 %v271_v48, 0.0 }
  0xd6   :  { %v1439_v53 = vpop.f32.mrf.mxu0 }
  0xd7   :  { %v375_v55 = vmax.f32 %v263_v51, 0.0  ;;  %v405_v59 = vpack.c.bf16 %v377_v52, %v376_v56  ;;  %v284_v63 = vadd.f32 %v1439_v53, %v1776_v31 }
  0xd8   :  { %v275_v57 = vpop.f32.mrf.mxu0 }
  0xd9   :  { %v404_v58 = vpack.c.bf16 %v375_v55, %v374_v54  ;;  %v276_v61 = vadd.f32 %v1776_v31, %v275_v57  ;;  %v380_v6 = vmax.f32 %v284_v63, 0.0 }
  0xda   :  { %v1440_v60 = vpop.f32.mrf.mxu0 }
  0xdb   :  { %v287_v62 = vadd.f32 %v1440_v60, %v1776_v31  ;;  %1481 = vmatprep.mubr.bf16.mxu1 %v404_v58  ;;  %v378_v4 = vmax.f32 %v276_v61, 0.0 }
  0xdc   :  { %v278_v0 = vpop.f32.mrf.mxu0  ;;  %1482 = vmatmul.mubr.bf16.gmra.mxu1 %v405_v59 }
  0xdd   :  { %v279_v1 = vadd.f32 %v1776_v31, %v278_v0  ;;  %v381_v2 = vmax.f32 %v287_v62, 0.0 }
  0xde   :  { %v1443_v3 = vpop.f32.mrf.mxu0 }
  0xdf   :  { %v379_v5 = vmax.f32 %v279_v1, 0.0  ;;  %v407_v9 = vpack.c.bf16 %v381_v2, %v380_v6  ;;  %v300_v13 = vadd.f32 %v1443_v3, %v1776_v31 }
  0xe0   :  { %v291_v7 = vpop.f32.mrf.mxu0 }
  0xe1   :  { %v406_v8 = vpack.c.bf16 %v379_v5, %v378_v4  ;;  %v292_v11 = vadd.f32 %v1776_v31, %v291_v7  ;;  %v384_v20 = vmax.f32 %v300_v13, 0.0 }
  0xe2   :  { %v1444_v10 = vpop.f32.mrf.mxu0 }
  0xe3   :  { %v303_v12 = vadd.f32 %v1444_v10, %v1776_v31  ;;  %1485 = vmatprep.mubr.bf16.mxu1 %v406_v8  ;;  %v382_v18 = vmax.f32 %v292_v11, 0.0 }
  0xe4   :  { %v294_v14 = vpop.f32.mrf.mxu0  ;;  %1486 = vmatmul.mubr.bf16.gmra.mxu1 %v407_v9 }
  0xe5   :  { %v295_v15 = vadd.f32 %v1776_v31, %v294_v14  ;;  %v385_v16 = vmax.f32 %v303_v12, 0.0 }
  0xe6   :  { %v1447_v17 = vpop.f32.mrf.mxu0 }
  0xe7   :  { %v383_v19 = vmax.f32 %v295_v15, 0.0  ;;  %v409_v23 = vpack.c.bf16 %v385_v16, %v384_v20  ;;  %v316_v27 = vadd.f32 %v1447_v17, %v1776_v31  ;;  %v1618_v15 = vld [vmem:[%s2092_s7 + $0x8] sm:$0xff]   ;;  %v1619_v16 = vld [vmem:[%s2092_s7] sm:$0xff]  }
  0xe8   :  { %v307_v21 = vpop.f32.mrf.mxu0  ;;  %1585 = vmatprep.subr.bf16.mxu1 %v1618_v15  ;;  %1549 = vmatprep.subr.bf16.mxu0 %v1618_v15 }
  0xe9   :  { %v408_v22 = vpack.c.bf16 %v383_v19, %v382_v18  ;;  %v308_v25 = vadd.f32 %v1776_v31, %v307_v21  ;;  %v388_v35 = vmax.f32 %v316_v27, 0.0  ;;  %1587 = vmatpush3.bf16.msra.mxu1 %v1618_v15  ;;  %v1819_v18 = vld [vmem:[%s2093_s4] ss:$0 sm:$0xff] }
  0xea   :  { %v1448_v24 = vpop.f32.mrf.mxu0  ;;  %1586 = vmatprep.subr.bf16.mxu1 %v1619_v16 }
  0xeb   :  { %v319_v26 = vadd.f32 %v1448_v24, %v1776_v31  ;;  %1489 = vmatprep.mubr.bf16.mxu1 %v408_v22  ;;  %v386_v33 = vmax.f32 %v308_v25, 0.0 }
  0xec   :  { %v310_v28 = vpop.f32.mrf.mxu0  ;;  %1490 = vmatmul.mubr.bf16.gmra.mxu1 %v409_v23 }
  0xed   :  { %v311_v29 = vadd.f32 %v1776_v31, %v310_v28  ;;  %v389_v30 = vmax.f32 %v319_v26, 0.0  ;;  %1588 = vmatpush3.bf16.msra.mxu1 %v1619_v16 }
  0xee   :  { %v1451_v32 = vpop.f32.mrf.mxu0 }
  0xef   :  { %v387_v34 = vmax.f32 %v311_v29, 0.0  ;;  %v411_v38 = vpack.c.bf16 %v389_v30, %v388_v35  ;;  %v332_v42 = vadd.f32 %v1451_v32, %v1776_v31 }
  0xf0   :  { %v323_v36 = vpop.f32.mrf.mxu0 }
  0xf1   :  { %v410_v37 = vpack.c.bf16 %v387_v34, %v386_v33  ;;  %v324_v40 = vadd.f32 %v1776_v31, %v323_v36  ;;  %v392_v49 = vmax.f32 %v332_v42, 0.0 }
  0xf2   :  { %v1452_v39 = vpop.f32.mrf.mxu0 }
  0xf3   :  { %v335_v41 = vadd.f32 %v1452_v39, %v1776_v31  ;;  %1493 = vmatprep.mubr.bf16.mxu1 %v410_v37  ;;  %v390_v47 = vmax.f32 %v324_v40, 0.0 }
  0xf4   :  { %v326_v43 = vpop.f32.mrf.mxu0  ;;  %1494 = vmatmul.mubr.bf16.gmra.mxu1 %v411_v38 }
  0xf5   :  { %v327_v44 = vadd.f32 %v1776_v31, %v326_v43  ;;  %v393_v45 = vmax.f32 %v335_v41, 0.0 }
  0xf6   :  { %v1455_v46 = vpop.f32.mrf.mxu0 }
  0xf7   :  { %v391_v48 = vmax.f32 %v327_v44, 0.0  ;;  %v413_v52 = vpack.c.bf16 %v393_v45, %v392_v49  ;;  %v348_v56 = vadd.f32 %v1455_v46, %v1776_v31 }
  0xf8   :  { %v339_v50 = vpop.f32.mrf.mxu0 }
  0xf9   :  { %v412_v51 = vpack.c.bf16 %v391_v48, %v390_v47  ;;  %v340_v54 = vadd.f32 %v1776_v31, %v339_v50  ;;  %v396_v63 = vmax.f32 %v348_v56, 0.0 }
  0xfa   :  { %v1456_v53 = vpop.f32.mrf.mxu0 }
  0xfb   :  { %v351_v55 = vadd.f32 %v1456_v53, %v1776_v31  ;;  %1497 = vmatprep.mubr.bf16.mxu1 %v412_v51  ;;  %v394_v61 = vmax.f32 %v340_v54, 0.0 }
  0xfc   :  { %v342_v57 = vpop.f32.mrf.mxu0  ;;  %1498 = vmatmul.mubr.bf16.gmra.mxu1 %v413_v52 }
  0xfd   :  { %v343_v58 = vadd.f32 %v1776_v31, %v342_v57  ;;  %v397_v59 = vmax.f32 %v351_v55, 0.0 }
  0xfe   :  { %v1459_v60 = vpop.f32.mrf.mxu0 }
  0xff   :  { %v395_v62 = vmax.f32 %v343_v58, 0.0  ;;  %v415_v2 = vpack.c.bf16 %v397_v59, %v396_v63  ;;  %v364_v6 = vadd.f32 %v1459_v60, %v1776_v31 }
 0x100   :  { %v355_v0 = vpop.f32.mrf.mxu0 }
 0x101   :  { %v414_v1 = vpack.c.bf16 %v395_v62, %v394_v61  ;;  %v356_v4 = vadd.f32 %v1776_v31, %v355_v0  ;;  %v400_v12 = vmax.f32 %v364_v6, 0.0 }
 0x102   :  { %v1460_v3 = vpop.f32.mrf.mxu0 }
 0x103   :  { %v367_v5 = vadd.f32 %v1460_v3, %v1776_v31  ;;  %1501 = vmatprep.mubr.bf16.mxu1 %v414_v1  ;;  %v398_v10 = vmax.f32 %v356_v4, 0.0 }
 0x104   :  { %v358_v7 = vpop.f32.mrf.mxu0  ;;  %1502 = vmatmul.mubr.bf16.gmra.mxu1 %v415_v2 }
 0x105   :  { %v359_v8 = vadd.f32 %v1776_v31, %v358_v7  ;;  %v401_v9 = vmax.f32 %v367_v5, 0.0 }
 0x107   :  { %v399_v11 = vmax.f32 %v359_v8, 0.0  ;;  %v417_v14 = vpack.c.bf16 %v401_v9, %v400_v12 }
 0x109   :  { %v416_v13 = vpack.c.bf16 %v399_v11, %v398_v10 }
 0x10b   :  { %1505 = vmatprep.mubr.bf16.mxu1 %v416_v13 }
 0x10c   :  { %1506 = vmatmul.mubr.bf16.gmra.mxu1 %v417_v14 }
 0x194   :  { %v1479_v31 = vpop.f32.mrf.mxu1 }
 0x195   :  { %v532_v22 = vadd.f32 %v1479_v31, %v1819_v18 }
 0x196   :  { %v523_v17 = vpop.f32.mrf.mxu1 }
 0x197   :  { %v524_v20 = vadd.f32 %v1819_v18, %v523_v17  ;;  %v652_v29 = vmax.f32 %v532_v22, 0.0 }
 0x198   :  { %v1480_v19 = vpop.f32.mrf.mxu1 }
 0x199   :  { %v535_v21 = vadd.f32 %v1480_v19, %v1819_v18  ;;  %v650_v27 = vmax.f32 %v524_v20, 0.0 }
 0x19a   :  { %v526_v23 = vpop.f32.mrf.mxu1 }
 0x19b   :  { %v527_v24 = vadd.f32 %v1819_v18, %v526_v23  ;;  %v653_v25 = vmax.f32 %v535_v21, 0.0 }
 0x19c   :  { %v1483_v26 = vpop.f32.mrf.mxu1 }
 0x19d   :  { %v651_v28 = vmax.f32 %v527_v24, 0.0  ;;  %v683_v33 = vpack.c.bf16 %v653_v25, %v652_v29  ;;  %v548_v37 = vadd.f32 %v1483_v26, %v1819_v18 }
 0x19e   :  { %v539_v30 = vpop.f32.mrf.mxu1 }
 0x19f   :  { %v682_v32 = vpack.c.bf16 %v651_v28, %v650_v27  ;;  %v540_v35 = vadd.f32 %v1819_v18, %v539_v30  ;;  %v656_v44 = vmax.f32 %v548_v37, 0.0 }
 0x1a0   :  { %v1484_v34 = vpop.f32.mrf.mxu1 }
 0x1a1   :  { %v551_v36 = vadd.f32 %v1484_v34, %v1819_v18  ;;  %1517 = vmatprep.mubr.msk.bf16.mxu0 %vm737_vm1, %v682_v32  ;;  %v654_v42 = vmax.f32 %v540_v35, 0.0 }
 0x1a2   :  { %v542_v38 = vpop.f32.mrf.mxu1  ;;  %1518 = vmatmul.mubr.msk.bf16.vlgmr.msra.gmra.mxu0 %vm737_vm1, %v683_v33 }
 0x1a3   :  { %v543_v39 = vadd.f32 %v1819_v18, %v542_v38  ;;  %1550 = vmatpush3.bf16.msra.mxu0 %v1618_v15  ;;  %v657_v40 = vmax.f32 %v551_v36, 0.0 }
 0x1a4   :  { %v1487_v41 = vpop.f32.mrf.mxu1  ;;  %1551 = vmatprep.subr.bf16.mxu0 %v1619_v16 }
 0x1a5   :  { %v655_v43 = vmax.f32 %v543_v39, 0.0  ;;  %v685_v47 = vpack.c.bf16 %v657_v40, %v656_v44  ;;  %v564_v51 = vadd.f32 %v1487_v41, %v1819_v18 }
 0x1a6   :  { %v555_v45 = vpop.f32.mrf.mxu1 }
 0x1a7   :  { %v684_v46 = vpack.c.bf16 %v655_v43, %v654_v42  ;;  %1552 = vmatpush3.bf16.msra.mxu0 %v1619_v16  ;;  %v556_v49 = vadd.f32 %v1819_v18, %v555_v45  ;;  %v660_v58 = vmax.f32 %v564_v51, 0.0 }
 0x1a8   :  { %v1488_v48 = vpop.f32.mrf.mxu1 }
 0x1a9   :  { %v567_v50 = vadd.f32 %v1488_v48, %v1819_v18  ;;  %1521 = vmatprep.mubr.msk.bf16.mxu0 %vm737_vm1, %v684_v46  ;;  %v658_v56 = vmax.f32 %v556_v49, 0.0 }
 0x1aa   :  { %v558_v52 = vpop.f32.mrf.mxu1  ;;  %1522 = vmatmul.mubr.msk.bf16.gmra.mxu0 %vm737_vm1, %v685_v47 }
 0x1ab   :  { %v559_v53 = vadd.f32 %v1819_v18, %v558_v52  ;;  %v661_v54 = vmax.f32 %v567_v50, 0.0 }
 0x1ac   :  { %v1491_v55 = vpop.f32.mrf.mxu1 }
 0x1ad   :  { %v659_v57 = vmax.f32 %v559_v53, 0.0  ;;  %v687_v61 = vpack.c.bf16 %v661_v54, %v660_v58  ;;  %v580_v1 = vadd.f32 %v1491_v55, %v1819_v18 }
 0x1ae   :  { %v571_v59 = vpop.f32.mrf.mxu1 }
 0x1af   :  { %v686_v60 = vpack.c.bf16 %v659_v57, %v658_v56  ;;  %v572_v63 = vadd.f32 %v1819_v18, %v571_v59  ;;  %v664_v8 = vmax.f32 %v580_v1, 0.0 }
 0x1b0   :  { %v1492_v62 = vpop.f32.mrf.mxu1 }
 0x1b1   :  { %v583_v0 = vadd.f32 %v1492_v62, %v1819_v18  ;;  %1525 = vmatprep.mubr.msk.bf16.mxu0 %vm737_vm1, %v686_v60  ;;  %v662_v6 = vmax.f32 %v572_v63, 0.0 }
 0x1b2   :  { %v574_v2 = vpop.f32.mrf.mxu1  ;;  %1526 = vmatmul.mubr.msk.bf16.gmra.mxu0 %vm737_vm1, %v687_v61 }
 0x1b3   :  { %v575_v3 = vadd.f32 %v1819_v18, %v574_v2  ;;  %v665_v4 = vmax.f32 %v583_v0, 0.0 }
 0x1b4   :  { %v1495_v5 = vpop.f32.mrf.mxu1 }
 0x1b5   :  { %v663_v7 = vmax.f32 %v575_v3, 0.0  ;;  %v689_v11 = vpack.c.bf16 %v665_v4, %v664_v8  ;;  %v596_v15 = vadd.f32 %v1495_v5, %v1819_v18  ;;  %v1872_v5 = vld [vmem:[%s2094_s6] ss:$0 sm:$0xff] }
 0x1b6   :  { %v587_v9 = vpop.f32.mrf.mxu1 }
 0x1b7   :  { %v688_v10 = vpack.c.bf16 %v663_v7, %v662_v6  ;;  %v588_v13 = vadd.f32 %v1819_v18, %v587_v9  ;;  %v668_v22 = vmax.f32 %v596_v15, 0.0 }
 0x1b8   :  { %v1496_v12 = vpop.f32.mrf.mxu1 }
 0x1b9   :  { %v599_v14 = vadd.f32 %v1496_v12, %v1819_v18  ;;  %1529 = vmatprep.mubr.msk.bf16.mxu0 %vm737_vm1, %v688_v10  ;;  %v666_v20 = vmax.f32 %v588_v13, 0.0 }
 0x1ba   :  { %v590_v16 = vpop.f32.mrf.mxu1  ;;  %1530 = vmatmul.mubr.msk.bf16.gmra.mxu0 %vm737_vm1, %v689_v11 }
 0x1bb   :  { %v591_v31 = vadd.f32 %v1819_v18, %v590_v16  ;;  %v669_v17 = vmax.f32 %v599_v14, 0.0 }
 0x1bc   :  { %v1499_v19 = vpop.f32.mrf.mxu1 }
 0x1bd   :  { %v667_v21 = vmax.f32 %v591_v31, 0.0  ;;  %v691_v25 = vpack.c.bf16 %v669_v17, %v668_v22  ;;  %v612_v29 = vadd.f32 %v1499_v19, %v1819_v18 }
 0x1be   :  { %v603_v23 = vpop.f32.mrf.mxu1 }
 0x1bf   :  { %v690_v24 = vpack.c.bf16 %v667_v21, %v666_v20  ;;  %v604_v27 = vadd.f32 %v1819_v18, %v603_v23  ;;  %v672_v37 = vmax.f32 %v612_v29, 0.0 }
 0x1c0   :  { %v1500_v26 = vpop.f32.mrf.mxu1 }
 0x1c1   :  { %v615_v28 = vadd.f32 %v1500_v26, %v1819_v18  ;;  %1533 = vmatprep.mubr.msk.bf16.mxu0 %vm737_vm1, %v690_v24  ;;  %v670_v35 = vmax.f32 %v604_v27, 0.0 }
 0x1c2   :  { %v606_v30 = vpop.f32.mrf.mxu1  ;;  %1534 = vmatmul.mubr.msk.bf16.gmra.mxu0 %vm737_vm1, %v691_v25 }
 0x1c3   :  { %v607_v32 = vadd.f32 %v1819_v18, %v606_v30  ;;  %v673_v33 = vmax.f32 %v615_v28, 0.0 }
 0x1c4   :  { %v1503_v34 = vpop.f32.mrf.mxu1 }
 0x1c5   :  { %v671_v36 = vmax.f32 %v607_v32, 0.0  ;;  %v693_v40 = vpack.c.bf16 %v673_v33, %v672_v37  ;;  %v628_v44 = vadd.f32 %v1503_v34, %v1819_v18 }
 0x1c6   :  { %v619_v38 = vpop.f32.mrf.mxu1 }
 0x1c7   :  { %v692_v39 = vpack.c.bf16 %v671_v36, %v670_v35  ;;  %v620_v42 = vadd.f32 %v1819_v18, %v619_v38  ;;  %v676_v51 = vmax.f32 %v628_v44, 0.0 }
 0x1c8   :  { %v1504_v41 = vpop.f32.mrf.mxu1 }
 0x1c9   :  { %v631_v43 = vadd.f32 %v1504_v41, %v1819_v18  ;;  %1537 = vmatprep.mubr.msk.bf16.mxu0 %vm737_vm1, %v692_v39  ;;  %v674_v49 = vmax.f32 %v620_v42, 0.0 }
 0x1ca   :  { %v622_v45 = vpop.f32.mrf.mxu1  ;;  %1538 = vmatmul.mubr.msk.bf16.gmra.mxu0 %vm737_vm1, %v693_v40 }
 0x1cb   :  { %v623_v46 = vadd.f32 %v1819_v18, %v622_v45  ;;  %v677_v47 = vmax.f32 %v631_v43, 0.0 }
 0x1cc   :  { %v1507_v48 = vpop.f32.mrf.mxu1 }
 0x1cd   :  { %v675_v50 = vmax.f32 %v623_v46, 0.0  ;;  %v695_v54 = vpack.c.bf16 %v677_v47, %v676_v51  ;;  %v644_v58 = vadd.f32 %v1507_v48, %v1819_v18 }
 0x1ce   :  { %v635_v52 = vpop.f32.mrf.mxu1 }
 0x1cf   :  { %v694_v53 = vpack.c.bf16 %v675_v50, %v674_v49  ;;  %v636_v56 = vadd.f32 %v1819_v18, %v635_v52  ;;  %v680_v0 = vmax.f32 %v644_v58, 0.0 }
 0x1d0   :  { %v1508_v55 = vpop.f32.mrf.mxu1 }
 0x1d1   :  { %v647_v57 = vadd.f32 %v1508_v55, %v1819_v18  ;;  %1541 = vmatprep.mubr.msk.bf16.mxu0 %vm737_vm1, %v694_v53  ;;  %v678_v62 = vmax.f32 %v636_v56, 0.0 }
 0x1d2   :  { %v638_v59 = vpop.f32.mrf.mxu1  ;;  %1542 = vmatmul.mubr.msk.bf16.gmra.mxu0 %vm737_vm1, %v695_v54 }
 0x1d3   :  { %v639_v60 = vadd.f32 %v1819_v18, %v638_v59  ;;  %v681_v61 = vmax.f32 %v647_v57, 0.0 }
 0x1d5   :  { %v679_v63 = vmax.f32 %v639_v60, 0.0  ;;  %v697_v2 = vpack.c.bf16 %v681_v61, %v680_v0 }
 0x1d7   :  { %v696_v1 = vpack.c.bf16 %v679_v63, %v678_v62 }
 0x1d9   :  { %1545 = vmatprep.mubr.msk.bf16.mxu0 %vm737_vm1, %v696_v1 }
 0x1da   :  { %1546 = vmatmul.mubr.msk.bf16.gmra.mxu0 %vm737_vm1, %v697_v2 }
 0x262   :  { %v1519_v3 = vpop.f32.mrf.mxu0 }
 0x263   :  { %v829_v8 = vadd.f32 %v1519_v3, %v1872_v5 }
 0x264   :  { %v820_v4 = vpop.f32.mrf.mxu0 }
 0x265   :  { %v821_v18 = vadd.f32 %v1872_v5, %v820_v4  ;;  %v949_v15 = vmax.f32 %v829_v8, 0.0 }
 0x266   :  { %v1520_v6 = vpop.f32.mrf.mxu0 }
 0x267   :  { %v832_v7 = vadd.f32 %v1520_v6, %v1872_v5  ;;  %v947_v13 = vmax.f32 %v821_v18, 0.0 }
 0x268   :  { %v823_v9 = vpop.f32.mrf.mxu0 }
 0x269   :  { %v824_v10 = vadd.f32 %v1872_v5, %v823_v9  ;;  %v950_v11 = vmax.f32 %v832_v7, 0.0 }
 0x26a   :  { %v1523_v12 = vpop.f32.mrf.mxu0 }
 0x26b   :  { %v948_v14 = vmax.f32 %v824_v10, 0.0  ;;  %v980_v17 = vpack.c.bf16 %v950_v11, %v949_v15  ;;  %v845_v22 = vadd.f32 %v1523_v12, %v1872_v5 }
 0x26c   :  { %v836_v16 = vpop.f32.mrf.mxu0 }
 0x26d   :  { %v979_v31 = vpack.c.bf16 %v948_v14, %v947_v13  ;;  %v837_v20 = vadd.f32 %v1872_v5, %v836_v16  ;;  %v953_v29 = vmax.f32 %v845_v22, 0.0 }
 0x26e   :  { %v1524_v19 = vpop.f32.mrf.mxu0 }
 0x26f   :  { %v848_v21 = vadd.f32 %v1524_v19, %v1872_v5  ;;  %1553 = vmatprep.mubr.msk.bf16.mxu0 %vm1018_vm2, %v979_v31  ;;  %v951_v27 = vmax.f32 %v837_v20, 0.0 }
 0x270   :  { %v839_v23 = vpop.f32.mrf.mxu0  ;;  %1554 = vmatmul.mubr.msk.bf16.vlgmr.msra.gmra.mxu0 %vm1018_vm2, %v980_v17 }
 0x271   :  { %v840_v24 = vadd.f32 %v1872_v5, %v839_v23  ;;  %v954_v25 = vmax.f32 %v848_v21, 0.0 }
 0x272   :  { %v1527_v26 = vpop.f32.mrf.mxu0 }
 0x273   :  { %v952_v28 = vmax.f32 %v840_v24, 0.0  ;;  %v982_v33 = vpack.c.bf16 %v954_v25, %v953_v29  ;;  %v861_v37 = vadd.f32 %v1527_v26, %v1872_v5 }
 0x274   :  { %v852_v30 = vpop.f32.mrf.mxu0 }
 0x275   :  { %v981_v32 = vpack.c.bf16 %v952_v28, %v951_v27  ;;  %v853_v35 = vadd.f32 %v1872_v5, %v852_v30  ;;  %v957_v44 = vmax.f32 %v861_v37, 0.0 }
 0x276   :  { %v1528_v34 = vpop.f32.mrf.mxu0 }
 0x277   :  { %v864_v36 = vadd.f32 %v1528_v34, %v1872_v5  ;;  %1557 = vmatprep.mubr.msk.bf16.mxu1 %vm1018_vm2, %v981_v32  ;;  %v955_v42 = vmax.f32 %v853_v35, 0.0 }
 0x278   :  { %v855_v38 = vpop.f32.mrf.mxu0  ;;  %1558 = vmatmul.mubr.msk.bf16.vlgmr.msra.gmra.mxu1 %vm1018_vm2, %v982_v33 }
 0x279   :  { %v856_v39 = vadd.f32 %v1872_v5, %v855_v38  ;;  %v958_v40 = vmax.f32 %v864_v36, 0.0 }
 0x27a   :  { %v1531_v41 = vpop.f32.mrf.mxu0 }
 0x27b   :  { %v956_v43 = vmax.f32 %v856_v39, 0.0  ;;  %v984_v47 = vpack.c.bf16 %v958_v40, %v957_v44  ;;  %v877_v51 = vadd.f32 %v1531_v41, %v1872_v5 }
 0x27c   :  { %v868_v45 = vpop.f32.mrf.mxu0 }
 0x27d   :  { %v983_v46 = vpack.c.bf16 %v956_v43, %v955_v42  ;;  %v869_v49 = vadd.f32 %v1872_v5, %v868_v45  ;;  %v961_v58 = vmax.f32 %v877_v51, 0.0 }
 0x27e   :  { %v1532_v48 = vpop.f32.mrf.mxu0 }
 0x27f   :  { %v880_v50 = vadd.f32 %v1532_v48, %v1872_v5  ;;  %1561 = vmatprep.mubr.msk.bf16.mxu1 %vm1018_vm2, %v983_v46  ;;  %v959_v56 = vmax.f32 %v869_v49, 0.0 }
 0x280   :  { %v871_v52 = vpop.f32.mrf.mxu0  ;;  %1562 = vmatmul.mubr.msk.bf16.gmra.mxu1 %vm1018_vm2, %v984_v47 }
 0x281   :  { %v872_v53 = vadd.f32 %v1872_v5, %v871_v52  ;;  %v962_v54 = vmax.f32 %v880_v50, 0.0 }
 0x282   :  { %v1535_v55 = vpop.f32.mrf.mxu0 }
 0x283   :  { %v960_v57 = vmax.f32 %v872_v53, 0.0  ;;  %v986_v61 = vpack.c.bf16 %v962_v54, %v961_v58  ;;  %v893_v1 = vadd.f32 %v1535_v55, %v1872_v5  ;;  %v1925_v53 = vld [vmem:[%s2095_s8] ss:$0 sm:$0xff] }
 0x284   :  { %v884_v59 = vpop.f32.mrf.mxu0 }
 0x285   :  { %v985_v60 = vpack.c.bf16 %v960_v57, %v959_v56  ;;  %v885_v63 = vadd.f32 %v1872_v5, %v884_v59  ;;  %v965_v8 = vmax.f32 %v893_v1, 0.0 }
 0x286   :  { %v1536_v62 = vpop.f32.mrf.mxu0 }
 0x287   :  { %v896_v0 = vadd.f32 %v1536_v62, %v1872_v5  ;;  %1565 = vmatprep.mubr.msk.bf16.mxu1 %vm1018_vm2, %v985_v60  ;;  %v963_v18 = vmax.f32 %v885_v63, 0.0 }
 0x288   :  { %v887_v2 = vpop.f32.mrf.mxu0  ;;  %1566 = vmatmul.mubr.msk.bf16.gmra.mxu1 %vm1018_vm2, %v986_v61 }
 0x289   :  { %v888_v3 = vadd.f32 %v1872_v5, %v887_v2  ;;  %v966_v4 = vmax.f32 %v896_v0, 0.0 }
 0x28a   :  { %v1539_v6 = vpop.f32.mrf.mxu0 }
 0x28b   :  { %v964_v7 = vmax.f32 %v888_v3, 0.0  ;;  %v988_v11 = vpack.c.bf16 %v966_v4, %v965_v8  ;;  %v909_v15 = vadd.f32 %v1539_v6, %v1872_v5 }
 0x28c   :  { %v900_v9 = vpop.f32.mrf.mxu0 }
 0x28d   :  { %v987_v10 = vpack.c.bf16 %v964_v7, %v963_v18  ;;  %v901_v13 = vadd.f32 %v1872_v5, %v900_v9  ;;  %v969_v22 = vmax.f32 %v909_v15, 0.0 }
 0x28e   :  { %v1540_v12 = vpop.f32.mrf.mxu0 }
 0x28f   :  { %v912_v14 = vadd.f32 %v1540_v12, %v1872_v5  ;;  %1569 = vmatprep.mubr.msk.bf16.mxu1 %vm1018_vm2, %v987_v10  ;;  %v967_v20 = vmax.f32 %v901_v13, 0.0 }
 0x290   :  { %v903_v16 = vpop.f32.mrf.mxu0  ;;  %1570 = vmatmul.mubr.msk.bf16.gmra.mxu1 %vm1018_vm2, %v988_v11 }
 0x291   :  { %v904_v31 = vadd.f32 %v1872_v5, %v903_v16  ;;  %v970_v17 = vmax.f32 %v912_v14, 0.0 }
 0x292   :  { %v1543_v19 = vpop.f32.mrf.mxu0 }
 0x293   :  { %v968_v21 = vmax.f32 %v904_v31, 0.0  ;;  %v990_v25 = vpack.c.bf16 %v970_v17, %v969_v22  ;;  %v925_v29 = vadd.f32 %v1543_v19, %v1872_v5 }
 0x294   :  { %v916_v23 = vpop.f32.mrf.mxu0 }
 0x295   :  { %v989_v24 = vpack.c.bf16 %v968_v21, %v967_v20  ;;  %v917_v27 = vadd.f32 %v1872_v5, %v916_v23  ;;  %v973_v37 = vmax.f32 %v925_v29, 0.0 }
 0x296   :  { %v1544_v26 = vpop.f32.mrf.mxu0 }
 0x297   :  { %v928_v28 = vadd.f32 %v1544_v26, %v1872_v5  ;;  %1573 = vmatprep.mubr.msk.bf16.mxu1 %vm1018_vm2, %v989_v24  ;;  %v971_v35 = vmax.f32 %v917_v27, 0.0 }
 0x298   :  { %v919_v30 = vpop.f32.mrf.mxu0  ;;  %1574 = vmatmul.mubr.msk.bf16.gmra.mxu1 %vm1018_vm2, %v990_v25 }
 0x299   :  { %v920_v32 = vadd.f32 %v1872_v5, %v919_v30  ;;  %v974_v33 = vmax.f32 %v928_v28, 0.0 }
 0x29a   :  { %v1547_v34 = vpop.f32.mrf.mxu0 }
 0x29b   :  { %v972_v36 = vmax.f32 %v920_v32, 0.0  ;;  %v992_v40 = vpack.c.bf16 %v974_v33, %v973_v37  ;;  %v941_v44 = vadd.f32 %v1547_v34, %v1872_v5 }
 0x29c   :  { %v932_v38 = vpop.f32.mrf.mxu0 }
 0x29d   :  { %v991_v39 = vpack.c.bf16 %v972_v36, %v971_v35  ;;  %v933_v42 = vadd.f32 %v1872_v5, %v932_v38  ;;  %v977_v50 = vmax.f32 %v941_v44, 0.0 }
 0x29e   :  { %v1548_v41 = vpop.f32.mrf.mxu0 }
 0x29f   :  { %v944_v43 = vadd.f32 %v1548_v41, %v1872_v5  ;;  %1577 = vmatprep.mubr.msk.bf16.mxu1 %vm1018_vm2, %v991_v39  ;;  %v975_v48 = vmax.f32 %v933_v42, 0.0 }
 0x2a0   :  { %v935_v45 = vpop.f32.mrf.mxu0  ;;  %1578 = vmatmul.mubr.msk.bf16.gmra.mxu1 %vm1018_vm2, %v992_v40 }
 0x2a1   :  { %v936_v46 = vadd.f32 %v1872_v5, %v935_v45  ;;  %v978_v47 = vmax.f32 %v944_v43, 0.0 }
 0x2a3   :  { %v976_v49 = vmax.f32 %v936_v46, 0.0  ;;  %v994_v52 = vpack.c.bf16 %v978_v47, %v977_v50 }
 0x2a5   :  { %v993_v51 = vpack.c.bf16 %v976_v49, %v975_v48 }
 0x2a7   :  { %1581 = vmatprep.mubr.msk.bf16.mxu1 %vm1018_vm2, %v993_v51 }
 0x2a8   :  { %1582 = vmatmul.mubr.msk.bf16.gmra.mxu1 %vm1018_vm2, %v994_v52 }
 0x330   :  { %v1555_v54 = vpop.f32.mrf.mxu0 }
 0x331   :  { %v1110_v55 = vadd.f32 %v1555_v54, %v1925_v53 }
 0x332   :  { %v1101_v5 = vpop.f32.mrf.mxu0 }
 0x333   :  { %1231 = vst.msk [vmem:[%s2096_s9 + $0x10] sm:$0xff] %vm1228_vm3, %v1110_v55  ;;  %v1102_v56 = vadd.f32 %v1925_v53, %v1101_v5 }
 0x334   :  { %v1556_v57 = vpop.f32.mrf.mxu0 }
 0x335   :  { %1229 = vst.msk [vmem:[%s2096_s9] sm:$0xff] %vm1228_vm3, %v1102_v56  ;;  %v1113_v58 = vadd.f32 %v1556_v57, %v1925_v53 }
 0x336   :  { %v1104_v59 = vpop.f32.mrf.mxu0 }
 0x337   :  { %1232 = vst.msk [vmem:[%s2096_s9 + $0x18] sm:$0xff] %vm1228_vm3, %v1113_v58  ;;  %v1105_v60 = vadd.f32 %v1925_v53, %v1104_v59 }
 0x338   :  { %v1559_v61 = vpop.f32.mrf.mxu1 }
 0x339   :  { %1230 = vst.msk [vmem:[%s2096_s9 + $0x8] sm:$0xff] %vm1228_vm3, %v1105_v60  ;;  %v1126_v62 = vadd.f32 %v1559_v61, %v1925_v53 }
 0x33a   :  { %v1117_v63 = vpop.f32.mrf.mxu1 }
 0x33b   :  { %1235 = vst.msk [vmem:[%s2096_s9 + $0x30] sm:$0xff] %vm1228_vm3, %v1126_v62  ;;  %v1118_v0 = vadd.f32 %v1925_v53, %v1117_v63 }
 0x33c   :  { %v1560_v1 = vpop.f32.mrf.mxu1 }
 0x33d   :  { %1233 = vst.msk [vmem:[%s2096_s9 + $0x20] sm:$0xff] %vm1228_vm3, %v1118_v0  ;;  %v1129_v2 = vadd.f32 %v1560_v1, %v1925_v53 }
 0x33e   :  { %v1120_v3 = vpop.f32.mrf.mxu1 }
 0x33f   :  { %1236 = vst.msk [vmem:[%s2096_s9 + $0x38] sm:$0xff] %vm1228_vm3, %v1129_v2  ;;  %v1121_v4 = vadd.f32 %v1925_v53, %v1120_v3 }
 0x340   :  { %v1563_v6 = vpop.f32.mrf.mxu1 }
 0x341   :  { %1234 = vst.msk [vmem:[%s2096_s9 + $0x28] sm:$0xff] %vm1228_vm3, %v1121_v4  ;;  %v1142_v18 = vadd.f32 %v1563_v6, %v1925_v53 }
 0x342   :  { %v1133_v7 = vpop.f32.mrf.mxu1 }
 0x343   :  { %1239 = vst.msk [vmem:[%s2096_s9 + $0x50] sm:$0xff] %vm1228_vm3, %v1142_v18  ;;  %v1134_v8 = vadd.f32 %v1925_v53, %v1133_v7 }
 0x344   :  { %v1564_v9 = vpop.f32.mrf.mxu1 }
 0x345   :  { %1237 = vst.msk [vmem:[%s2096_s9 + $0x40] sm:$0xff] %vm1228_vm3, %v1134_v8  ;;  %v1145_v10 = vadd.f32 %v1564_v9, %v1925_v53 }
 0x346   :  { %v1136_v11 = vpop.f32.mrf.mxu1 }
 0x347   :  { %1240 = vst.msk [vmem:[%s2096_s9 + $0x58] sm:$0xff] %vm1228_vm3, %v1145_v10  ;;  %v1137_v12 = vadd.f32 %v1925_v53, %v1136_v11 }
 0x348   :  { %v1567_v13 = vpop.f32.mrf.mxu1 }
 0x349   :  { %1238 = vst.msk [vmem:[%s2096_s9 + $0x48] sm:$0xff] %vm1228_vm3, %v1137_v12  ;;  %v1158_v14 = vadd.f32 %v1567_v13, %v1925_v53 }
 0x34a   :  { %v1149_v15 = vpop.f32.mrf.mxu1 }
 0x34b   :  { %1243 = vst.msk [vmem:[%s2096_s9 + $0x70] sm:$0xff] %vm1228_vm3, %v1158_v14  ;;  %v1150_v16 = vadd.f32 %v1925_v53, %v1149_v15 }
 0x34c   :  { %v1568_v31 = vpop.f32.mrf.mxu1 }
 0x34d   :  { %1241 = vst.msk [vmem:[%s2096_s9 + $0x60] sm:$0xff] %vm1228_vm3, %v1150_v16  ;;  %v1161_v17 = vadd.f32 %v1568_v31, %v1925_v53 }
 0x34e   :  { %v1152_v19 = vpop.f32.mrf.mxu1 }
 0x34f   :  { %1244 = vst.msk [vmem:[%s2096_s9 + $0x78] sm:$0xff] %vm1228_vm3, %v1161_v17  ;;  %v1153_v20 = vadd.f32 %v1925_v53, %v1152_v19 }
 0x350   :  { %v1571_v21 = vpop.f32.mrf.mxu1 }
 0x351   :  { %1242 = vst.msk [vmem:[%s2096_s9 + $0x68] sm:$0xff] %vm1228_vm3, %v1153_v20  ;;  %v1174_v22 = vadd.f32 %v1571_v21, %v1925_v53 }
 0x352   :  { %v1165_v23 = vpop.f32.mrf.mxu1 }
 0x353   :  { %1247 = vst.msk [vmem:[%s2096_s9 + $0x90] sm:$0xff] %vm1228_vm3, %v1174_v22  ;;  %v1166_v24 = vadd.f32 %v1925_v53, %v1165_v23 }
 0x354   :  { %v1572_v25 = vpop.f32.mrf.mxu1 }
 0x355   :  { %1245 = vst.msk [vmem:[%s2096_s9 + $0x80] sm:$0xff] %vm1228_vm3, %v1166_v24  ;;  %v1177_v26 = vadd.f32 %v1572_v25, %v1925_v53 }
 0x356   :  { %v1168_v27 = vpop.f32.mrf.mxu1 }
 0x357   :  { %1248 = vst.msk [vmem:[%s2096_s9 + $0x98] sm:$0xff] %vm1228_vm3, %v1177_v26  ;;  %v1169_v28 = vadd.f32 %v1925_v53, %v1168_v27 }
 0x358   :  { %v1575_v29 = vpop.f32.mrf.mxu1 }
 0x359   :  { %1246 = vst.msk [vmem:[%s2096_s9 + $0x88] sm:$0xff] %vm1228_vm3, %v1169_v28  ;;  %v1190_v30 = vadd.f32 %v1575_v29, %v1925_v53 }
 0x35a   :  { %v1181_v32 = vpop.f32.mrf.mxu1 }
 0x35b   :  { %1251 = vst.msk [vmem:[%s2096_s9 + $0xb0] sm:$0xff] %vm1228_vm3, %v1190_v30  ;;  %v1182_v33 = vadd.f32 %v1925_v53, %v1181_v32 }
 0x35c   :  { %v1576_v34 = vpop.f32.mrf.mxu1 }
 0x35d   :  { %1249 = vst.msk [vmem:[%s2096_s9 + $0xa0] sm:$0xff] %vm1228_vm3, %v1182_v33  ;;  %v1193_v35 = vadd.f32 %v1576_v34, %v1925_v53 }
 0x35e   :  { %v1184_v36 = vpop.f32.mrf.mxu1 }
 0x35f   :  { %1252 = vst.msk [vmem:[%s2096_s9 + $0xb8] sm:$0xff] %vm1228_vm3, %v1193_v35  ;;  %v1185_v37 = vadd.f32 %v1925_v53, %v1184_v36 }
 0x360   :  { %v1579_v38 = vpop.f32.mrf.mxu1 }
 0x361   :  { %1250 = vst.msk [vmem:[%s2096_s9 + $0xa8] sm:$0xff] %vm1228_vm3, %v1185_v37  ;;  %v1206_v39 = vadd.f32 %v1579_v38, %v1925_v53 }
 0x362   :  { %v1197_v40 = vpop.f32.mrf.mxu1 }
 0x363   :  { %1255 = vst.msk [vmem:[%s2096_s9 + $0xd0] sm:$0xff] %vm1228_vm3, %v1206_v39  ;;  %v1198_v41 = vadd.f32 %v1925_v53, %v1197_v40 }
 0x364   :  { %v1580_v42 = vpop.f32.mrf.mxu1 }
 0x365   :  { %1253 = vst.msk [vmem:[%s2096_s9 + $0xc0] sm:$0xff] %vm1228_vm3, %v1198_v41  ;;  %v1209_v43 = vadd.f32 %v1580_v42, %v1925_v53 }
 0x366   :  { %v1200_v44 = vpop.f32.mrf.mxu1 }
 0x367   :  { %1256 = vst.msk [vmem:[%s2096_s9 + $0xd8] sm:$0xff] %vm1228_vm3, %v1209_v43  ;;  %v1201_v45 = vadd.f32 %v1925_v53, %v1200_v44 }
 0x368   :  { %v1583_v46 = vpop.f32.mrf.mxu1 }
 0x369   :  { %1254 = vst.msk [vmem:[%s2096_s9 + $0xc8] sm:$0xff] %vm1228_vm3, %v1201_v45  ;;  %v1222_v47 = vadd.f32 %v1583_v46, %v1925_v53 }
 0x36a   :  { %v1213_v48 = vpop.f32.mrf.mxu1 }
 0x36b   :  { %1259 = vst.msk [vmem:[%s2096_s9 + $0xf0] sm:$0xff] %vm1228_vm3, %v1222_v47  ;;  %v1214_v49 = vadd.f32 %v1925_v53, %v1213_v48 }
 0x36c   :  { %v1584_v50 = vpop.f32.mrf.mxu1 }
 0x36d   :  { %1257 = vst.msk [vmem:[%s2096_s9 + $0xe0] sm:$0xff] %vm1228_vm3, %v1214_v49  ;;  %v1225_v51 = vadd.f32 %v1584_v50, %v1925_v53 }
 0x36e   :  { %v1216_v52 = vpop.f32.mrf.mxu1 }
 0x36f   :  { %1260 = vst.msk [vmem:[%s2096_s9 + $0xf8] sm:$0xff] %vm1228_vm3, %v1225_v51  ;;  %v1217_v54 = vadd.f32 %v1925_v53, %v1216_v52 }
 0x371   :  { %1258 = vst.msk [vmem:[%s2096_s9 + $0xe8] sm:$0xff] %vm1228_vm3, %v1217_v54 }

</bundles_post_ra>
